<compile_context>
chip_gen: v6e
topology: v6e:2x2x1
jax: 0.10.0
libtpu: 0.0.40
codegen_flags: <defaults>
</compile_context>

<pallas_src>
import jax
import jax.numpy as jnp
from jax.experimental import pallas as pl
from jax.experimental.pallas import tpu as pltpu

SUBLANE = 8


def _round_up(x, m):
    return (x + m - 1) // m * m


def encoder_kernel(x_ref,
                   w1_ref, b1_ref,
                   w2_ref, b2_ref,
                   w3_ref, b3_ref,
                   w4_ref, b4_ref,
                   w5_ref, b5_ref,
                   o_ref):
    # featurizer = identity.
    h = x_ref[...]
    for w_ref, b_ref in ((w1_ref, b1_ref), (w2_ref, b2_ref), (w3_ref, b3_ref),
                         (w4_ref, b4_ref), (w5_ref, b5_ref)):
        # MXU matmul (bf16 operands by default) with f32 accumulation;
        # bias add + ReLU stay in f32 on the VPU.
        y = jnp.dot(h.astype(w_ref.dtype), w_ref[...],
                    preferred_element_type=jnp.float32)
        h = jnp.maximum(y + b_ref[...], 0.0)
    o_ref[...] = h.astype(o_ref.dtype)


def prepare_encoder_params(params, matmul_dtype=jnp.bfloat16):
    """One-time prep: W (out, in) -> (in, out) in matmul_dtype; b -> (1, out) f32.

    No feature-dim padding: full-array-dim blocks are legal and the kernel is
    HBM-bound, so widening the matmuls to 128 would only inflate DMA traffic.
    """
    prepped = []
    for (w, b) in params:
        w = jnp.asarray(w, jnp.float32)
        b = jnp.asarray(b, jnp.float32)
        prepped.append((w.T.astype(matmul_dtype), b[None, :]))
    return prepped


def _choose_tile_b(batch, max_tile_b=512):
    """Batch tile: large enough to amortize the ~0.35us/grid-step overhead,
    >= 2 grid steps when the batch allows it (v7x has 2 TensorCores), and sized
    from ceil(B / n_steps) so batch padding waste stays bounded."""
    b8 = _round_up(max(batch, 1), SUBLANE)
    if b8 <= 2 * SUBLANE:
        return b8                      # too small to split across cores
    n_steps = max(2, pl.cdiv(b8, max_tile_b))
    return _round_up(pl.cdiv(b8, n_steps), SUBLANE)


def encoder_forward(x, prepped_params, *, max_tile_b=512):
    """x: (B, input_dim). prepped_params: output of prepare_encoder_params."""
    x = jnp.asarray(x)
    B, in_dim = x.shape
    assert in_dim == prepped_params[0][0].shape[0]
    out_dim = prepped_params[-1][0].shape[1]
    matmul_dtype = prepped_params[0][0].dtype

    tile_b = _choose_tile_b(B, max_tile_b)
    n_steps = pl.cdiv(B, tile_b)
    b_pad = n_steps * tile_b

    # Cast activations to the matmul dtype outside the kernel (halves input DMA
    # bytes on the bf16 path) and pad only the batch rows -- no lane padding.
    x_in = x.astype(matmul_dtype)
    if b_pad != B:
        x_in = jnp.pad(x_in, ((0, b_pad - B), (0, 0)))

    flat_args = [x_in]
    in_specs = [pl.BlockSpec((tile_b, in_dim), lambda i: (i, 0))]
    for (w, b) in prepped_params:
        flat_args += [w, b]
        # Constant index_map -> weights/biases fetched once, VMEM-resident
        # across all grid steps (~40 KiB total).
        in_specs.append(pl.BlockSpec(w.shape, lambda i: (0, 0)))
        in_specs.append(pl.BlockSpec(b.shape, lambda i: (0, 0)))

    # Honest (unpadded) traffic estimate for XLA's scheduler.
    flops = 2 * b_pad * sum(w.shape[0] * w.shape[1] for w, _ in prepped_params)
    bytes_accessed = (
        x_in.size * x_in.dtype.itemsize
        + sum(w.size * w.dtype.itemsize + b.size * b.dtype.itemsize
              for w, b in prepped_params)
        + b_pad * out_dim * 4)

    out = pl.pallas_call(
        encoder_kernel,
        grid=(n_steps,),
        in_specs=in_specs,
        # Narrow (B, 16) output: the HBM block is fully contiguous and write
        # bytes drop 8x vs a 128-lane-padded slab; the kernel is HBM-bound so
        # the in-kernel masked vst is not the binding slot.
        out_specs=pl.BlockSpec((tile_b, out_dim), lambda i: (i, 0)),
        out_shape=jax.ShapeDtypeStruct((b_pad, out_dim), jnp.float32),
        compiler_params=pltpu.CompilerParams(
            dimension_semantics=("parallel",),   # megacore sharding on v7x
        ),
        cost_estimate=pl.CostEstimate(
            flops=flops, transcendentals=0, bytes_accessed=bytes_accessed),
    )(*flat_args)

    # Only batch rows were padded; slice them back off.
    return out[:B]


def init_linear(key, out_dim, in_dim):
    # Deterministic PyTorch-style uniform init: U(-1/sqrt(in), 1/sqrt(in)).
    kw, kb = jax.random.split(key)
    bound = 1.0 / jnp.sqrt(jnp.float32(in_dim))
    w = jax.random.uniform(kw, (out_dim, in_dim), jnp.float32, -bound, bound)
    b = jax.random.uniform(kb, (out_dim,), jnp.float32, -bound, bound)
    return w, b


if __name__ == "__main__":
    # Small shapes consistent with the module's forward.
    batch = 8
    input_dim = 32
    hidden1_dim = 64
    hidden2_dim = 64
    hidden3_dim = 64
    hidden4_dim = 64
    encoder_dim = 16

    key = jax.random.PRNGKey(0)
    kx, k1, k2, k3, k4, k5 = jax.random.split(key, 6)

    x = jax.random.normal(kx, (batch, input_dim), jnp.float32)
    params = [
        init_linear(k1, hidden1_dim, input_dim),
        init_linear(k2, hidden2_dim, hidden1_dim),
        init_linear(k3, hidden3_dim, hidden2_dim),
        init_linear(k4, hidden4_dim, hidden3_dim),
        init_linear(k5, encoder_dim, hidden4_dim),
    ]

    # Pure-JAX reference (f32).
    def ref_forward(x, params):
        h = x
        for (w, b) in params:
            h = jnp.maximum(h @ w.T + b, 0.0)
        return h

    expected = ref_forward(x, params)

    # Default fast path: bf16 matmuls, f32 accumulation + epilogue.
    prepped_bf16 = prepare_encoder_params(params)                 # bf16 weights
    out_bf16 = jax.block_until_ready(encoder_forward(x, prepped_bf16))
    assert out_bf16.shape == (batch, encoder_dim)
    assert jnp.allclose(out_bf16, expected, atol=5e-2, rtol=5e-2)

    # Exact path: f32 weights/activations.
    prepped_f32 = prepare_encoder_params(params, matmul_dtype=jnp.float32)
    out_f32 = jax.block_until_ready(encoder_forward(x, prepped_f32))
    assert out_f32.shape == (batch, encoder_dim)
    assert jnp.allclose(out_f32, expected, atol=1e-4, rtol=1e-4)

    print("KERNEL_OK")
</pallas_src>

<mosaic_0001>
module attributes {stable_mosaic.version = 11 : i64} {
  func.func @encoder_kernel(%arg0: i32, %arg1: memref<8x32xbf16, #tpu.memory_space<vmem>>, %arg2: memref<32x64xbf16, #tpu.memory_space<vmem>>, %arg3: memref<1x64xf32, #tpu.memory_space<vmem>>, %arg4: memref<64x64xbf16, #tpu.memory_space<vmem>>, %arg5: memref<1x64xf32, #tpu.memory_space<vmem>>, %arg6: memref<64x64xbf16, #tpu.memory_space<vmem>>, %arg7: memref<1x64xf32, #tpu.memory_space<vmem>>, %arg8: memref<64x64xbf16, #tpu.memory_space<vmem>>, %arg9: memref<1x64xf32, #tpu.memory_space<vmem>>, %arg10: memref<64x16xbf16, #tpu.memory_space<vmem>>, %arg11: memref<1x16xf32, #tpu.memory_space<vmem>>, %arg12: memref<8x16xf32, #tpu.memory_space<vmem>>) attributes {dimension_semantics = [#tpu.dimension_semantics<parallel>], iteration_bounds = array<i64: 1>, scalar_prefetch = 0 : i64, scratch_operands = 0 : i64, tpu.core_type = #tpu.core_type<tc>, window_params = [{transform_indices = @transform_0, window_bounds = array<i64: 8, 32>}, {pipeline_mode = #tpu.pipeline_mode<synchronous>, transform_indices = @transform_1, window_bounds = array<i64: 32, 64>}, {pipeline_mode = #tpu.pipeline_mode<synchronous>, transform_indices = @transform_2, window_bounds = array<i64: 1, 64>}, {pipeline_mode = #tpu.pipeline_mode<synchronous>, transform_indices = @transform_3, window_bounds = array<i64: 64, 64>}, {pipeline_mode = #tpu.pipeline_mode<synchronous>, transform_indices = @transform_4, window_bounds = array<i64: 1, 64>}, {pipeline_mode = #tpu.pipeline_mode<synchronous>, transform_indices = @transform_5, window_bounds = array<i64: 64, 64>}, {pipeline_mode = #tpu.pipeline_mode<synchronous>, transform_indices = @transform_6, window_bounds = array<i64: 1, 64>}, {pipeline_mode = #tpu.pipeline_mode<synchronous>, transform_indices = @transform_7, window_bounds = array<i64: 64, 64>}, {pipeline_mode = #tpu.pipeline_mode<synchronous>, transform_indices = @transform_8, window_bounds = array<i64: 1, 64>}, {pipeline_mode = #tpu.pipeline_mode<synchronous>, transform_indices = @transform_9, window_bounds = array<i64: 64, 16>}, {pipeline_mode = #tpu.pipeline_mode<synchronous>, transform_indices = @transform_10, window_bounds = array<i64: 1, 16>}, {transform_indices = @transform_11, window_bounds = array<i64: 8, 16>}]} {
    %c0 = arith.constant 0 : index
    %c0_0 = arith.constant 0 : index
    %0 = vector.load %arg1[%c0, %c0_0] : memref<8x32xbf16, #tpu.memory_space<vmem>>, vector<8x32xbf16>
    %c0_1 = arith.constant 0 : index
    %c0_2 = arith.constant 0 : index
    %1 = vector.load %arg2[%c0_1, %c0_2] : memref<32x64xbf16, #tpu.memory_space<vmem>>, vector<32x64xbf16>
    %cst = arith.constant dense<0.000000e+00> : vector<8x64xf32>
    %2 = tpu.matmul %0, %1, %cst {dimension_numbers = #tpu.dot_dimension_numbers<[1], [0], [0], [1], [0, 0, 1, 1], [], []>} : vector<8x32xbf16>, vector<32x64xbf16>, vector<8x64xf32> -> vector<8x64xf32>
    %c0_3 = arith.constant 0 : index
    %c0_4 = arith.constant 0 : index
    %3 = vector.load %arg3[%c0_3, %c0_4] : memref<1x64xf32, #tpu.memory_space<vmem>>, vector<1x64xf32>
    %4 = vector.broadcast %3 : vector<1x64xf32> to vector<8x64xf32>
    %5 = arith.addf %2, %4 : vector<8x64xf32>
    %cst_5 = arith.constant 0.000000e+00 : f32
    %6 = vector.broadcast %cst_5 : f32 to vector<8x64xf32>
    %7 = arith.maximumf %5, %6 : vector<8x64xf32>
    %8 = arith.truncf %7 : vector<8x64xf32> to vector<8x64xbf16>
    %c0_6 = arith.constant 0 : index
    %c0_7 = arith.constant 0 : index
    %9 = vector.load %arg4[%c0_6, %c0_7] : memref<64x64xbf16, #tpu.memory_space<vmem>>, vector<64x64xbf16>
    %cst_8 = arith.constant dense<0.000000e+00> : vector<8x64xf32>
    %10 = tpu.matmul %8, %9, %cst_8 {dimension_numbers = #tpu.dot_dimension_numbers<[1], [0], [0], [1], [0, 0, 1, 1], [], []>} : vector<8x64xbf16>, vector<64x64xbf16>, vector<8x64xf32> -> vector<8x64xf32>
    %c0_9 = arith.constant 0 : index
    %c0_10 = arith.constant 0 : index
    %11 = vector.load %arg5[%c0_9, %c0_10] : memref<1x64xf32, #tpu.memory_space<vmem>>, vector<1x64xf32>
    %12 = vector.broadcast %11 : vector<1x64xf32> to vector<8x64xf32>
    %13 = arith.addf %10, %12 : vector<8x64xf32>
    %cst_11 = arith.constant 0.000000e+00 : f32
    %14 = vector.broadcast %cst_11 : f32 to vector<8x64xf32>
    %15 = arith.maximumf %13, %14 : vector<8x64xf32>
    %16 = arith.truncf %15 : vector<8x64xf32> to vector<8x64xbf16>
    %c0_12 = arith.constant 0 : index
    %c0_13 = arith.constant 0 : index
    %17 = vector.load %arg6[%c0_12, %c0_13] : memref<64x64xbf16, #tpu.memory_space<vmem>>, vector<64x64xbf16>
    %cst_14 = arith.constant dense<0.000000e+00> : vector<8x64xf32>
    %18 = tpu.matmul %16, %17, %cst_14 {dimension_numbers = #tpu.dot_dimension_numbers<[1], [0], [0], [1], [0, 0, 1, 1], [], []>} : vector<8x64xbf16>, vector<64x64xbf16>, vector<8x64xf32> -> vector<8x64xf32>
    %c0_15 = arith.constant 0 : index
    %c0_16 = arith.constant 0 : index
    %19 = vector.load %arg7[%c0_15, %c0_16] : memref<1x64xf32, #tpu.memory_space<vmem>>, vector<1x64xf32>
    %20 = vector.broadcast %19 : vector<1x64xf32> to vector<8x64xf32>
    %21 = arith.addf %18, %20 : vector<8x64xf32>
    %cst_17 = arith.constant 0.000000e+00 : f32
    %22 = vector.broadcast %cst_17 : f32 to vector<8x64xf32>
    %23 = arith.maximumf %21, %22 : vector<8x64xf32>
    %24 = arith.truncf %23 : vector<8x64xf32> to vector<8x64xbf16>
    %c0_18 = arith.constant 0 : index
    %c0_19 = arith.constant 0 : index
    %25 = vector.load %arg8[%c0_18, %c0_19] : memref<64x64xbf16, #tpu.memory_space<vmem>>, vector<64x64xbf16>
    %cst_20 = arith.constant dense<0.000000e+00> : vector<8x64xf32>
    %26 = tpu.matmul %24, %25, %cst_20 {dimension_numbers = #tpu.dot_dimension_numbers<[1], [0], [0], [1], [0, 0, 1, 1], [], []>} : vector<8x64xbf16>, vector<64x64xbf16>, vector<8x64xf32> -> vector<8x64xf32>
    %c0_21 = arith.constant 0 : index
    %c0_22 = arith.constant 0 : index
    %27 = vector.load %arg9[%c0_21, %c0_22] : memref<1x64xf32, #tpu.memory_space<vmem>>, vector<1x64xf32>
    %28 = vector.broadcast %27 : vector<1x64xf32> to vector<8x64xf32>
    %29 = arith.addf %26, %28 : vector<8x64xf32>
    %cst_23 = arith.constant 0.000000e+00 : f32
    %30 = vector.broadcast %cst_23 : f32 to vector<8x64xf32>
    %31 = arith.maximumf %29, %30 : vector<8x64xf32>
    %32 = arith.truncf %31 : vector<8x64xf32> to vector<8x64xbf16>
    %c0_24 = arith.constant 0 : index
    %c0_25 = arith.constant 0 : index
    %33 = vector.load %arg10[%c0_24, %c0_25] : memref<64x16xbf16, #tpu.memory_space<vmem>>, vector<64x16xbf16>
    %cst_26 = arith.constant dense<0.000000e+00> : vector<8x16xf32>
    %34 = tpu.matmul %32, %33, %cst_26 {dimension_numbers = #tpu.dot_dimension_numbers<[1], [0], [0], [1], [0, 0, 1, 1], [], []>} : vector<8x64xbf16>, vector<64x16xbf16>, vector<8x16xf32> -> vector<8x16xf32>
    %c0_27 = arith.constant 0 : index
    %c0_28 = arith.constant 0 : index
    %35 = vector.load %arg11[%c0_27, %c0_28] : memref<1x16xf32, #tpu.memory_space<vmem>>, vector<1x16xf32>
    %36 = vector.broadcast %35 : vector<1x16xf32> to vector<8x16xf32>
    %37 = arith.addf %34, %36 : vector<8x16xf32>
    %cst_29 = arith.constant 0.000000e+00 : f32
    %38 = vector.broadcast %cst_29 : f32 to vector<8x16xf32>
    %39 = arith.maximumf %37, %38 : vector<8x16xf32>
    %c0_30 = arith.constant 0 : index
    %c0_31 = arith.constant 0 : index
    %40 = vector.load %arg12[%c0_30, %c0_31] : memref<8x16xf32, #tpu.memory_space<vmem>>, vector<8x16xf32>
    tpu.vector_store %arg12[%c0_30, %c0_31], %39 {strides = array<i32>} : memref<8x16xf32, #tpu.memory_space<vmem>>, vector<8x16xf32>,
    return
  }
  func.func @transform_0(%arg0: i32) -> (i32, i32) {
    %c0_i32 = arith.constant 0 : i32
    %c0_i32_0 = arith.constant 0 : i32
    return %arg0, %c0_i32 : i32, i32
  }
  func.func @transform_1(%arg0: i32) -> (i32, i32) {
    %c0_i32 = arith.constant 0 : i32
    %c0_i32_0 = arith.constant 0 : i32
    %c0_i32_1 = arith.constant 0 : i32
    return %c0_i32, %c0_i32_0 : i32, i32
  }
  func.func @transform_2(%arg0: i32) -> (i32, i32) {
    %c0_i32 = arith.constant 0 : i32
    %c0_i32_0 = arith.constant 0 : i32
    %c0_i32_1 = arith.constant 0 : i32
    return %c0_i32, %c0_i32_0 : i32, i32
  }
  func.func @transform_3(%arg0: i32) -> (i32, i32) {
    %c0_i32 = arith.constant 0 : i32
    %c0_i32_0 = arith.constant 0 : i32
    %c0_i32_1 = arith.constant 0 : i32
    return %c0_i32, %c0_i32_0 : i32, i32
  }
  func.func @transform_4(%arg0: i32) -> (i32, i32) {
    %c0_i32 = arith.constant 0 : i32
    %c0_i32_0 = arith.constant 0 : i32
    %c0_i32_1 = arith.constant 0 : i32
    return %c0_i32, %c0_i32_0 : i32, i32
  }
  func.func @transform_5(%arg0: i32) -> (i32, i32) {
    %c0_i32 = arith.constant 0 : i32
    %c0_i32_0 = arith.constant 0 : i32
    %c0_i32_1 = arith.constant 0 : i32
    return %c0_i32, %c0_i32_0 : i32, i32
  }
  func.func @transform_6(%arg0: i32) -> (i32, i32) {
    %c0_i32 = arith.constant 0 : i32
    %c0_i32_0 = arith.constant 0 : i32
    %c0_i32_1 = arith.constant 0 : i32
    return %c0_i32, %c0_i32_0 : i32, i32
  }
  func.func @transform_7(%arg0: i32) -> (i32, i32) {
    %c0_i32 = arith.constant 0 : i32
    %c0_i32_0 = arith.constant 0 : i32
    %c0_i32_1 = arith.constant 0 : i32
    return %c0_i32, %c0_i32_0 : i32, i32
  }
  func.func @transform_8(%arg0: i32) -> (i32, i32) {
    %c0_i32 = arith.constant 0 : i32
    %c0_i32_0 = arith.constant 0 : i32
    %c0_i32_1 = arith.constant 0 : i32
    return %c0_i32, %c0_i32_0 : i32, i32
  }
  func.func @transform_9(%arg0: i32) -> (i32, i32) {
    %c0_i32 = arith.constant 0 : i32
    %c0_i32_0 = arith.constant 0 : i32
    %c0_i32_1 = arith.constant 0 : i32
    return %c0_i32, %c0_i32_0 : i32, i32
  }
  func.func @transform_10(%arg0: i32) -> (i32, i32) {
    %c0_i32 = arith.constant 0 : i32
    %c0_i32_0 = arith.constant 0 : i32
    %c0_i32_1 = arith.constant 0 : i32
    return %c0_i32, %c0_i32_0 : i32, i32
  }
  func.func @transform_11(%arg0: i32) -> (i32, i32) {
    %c0_i32 = arith.constant 0 : i32
    %c0_i32_0 = arith.constant 0 : i32
    return %arg0, %c0_i32 : i32, i32
  }
}

</mosaic_0001>

<bundles_post_ra>
// kernel: tpu_custom_call.1
= control target key start
LH: loop header
LB: loop body
LE: loop exit
PB: predicated region body
PF: predicated region fallthrough
CT: control target
= control target key end

     0   :  { %16 = vsyncpa [#allocation3], 0  ;;  %s878_s0 = inlined_call_operand.vmem [shape: bf16[8,32], index: 0, kind: input, shape index: {}]   ;;  %s879_s1 = inlined_call_operand.hbm [shape: bf16[32,64], index: 1, kind: input, shape index: {}]   ;;  %s880_s2 = inlined_call_operand.vmem [shape: f32[1,64], index: 2, kind: input, shape index: {}]   ;;  %s881_s3 = inlined_call_operand.vmem [shape: bf16[64,64], index: 3, kind: input, shape index: {}]   ;;  %s882_s4 = inlined_call_operand.vmem [shape: f32[1,64], index: 4, kind: input, shape index: {}]   ;;  %s883_s5 = inlined_call_operand.hbm [shape: bf16[64,64], index: 5, kind: input, shape index: {}]   ;;  %s884_s6 = inlined_call_operand.vmem [shape: f32[1,64], index: 6, kind: input, shape index: {}]   ;;  %s885_s7 = inlined_call_operand.hbm [shape: bf16[64,64], index: 7, kind: input, shape index: {}]   ;;  %s886_s8 = inlined_call_operand.vmem [shape: f32[1,64], index: 8, kind: input, shape index: {}]   ;;  %s887_s9 = inlined_call_operand.vmem [shape: bf16[64,16], index: 9, kind: input, shape index: {}]   ;;  %s888_s10 = inlined_call_operand.vmem [shape: f32[1,16], index: 10, kind: input, shape index: {}]   ;;  %s889_s11 = inlined_call_operand.hbm [shape: f32[8,16], index: 11, kind: output, shape index: {}]  }
   0x1   :  { %17 = vsyncpa [#allocation6], 0 }
   0x2   :  { %18 = vsyncpa [#allocation4], 0  ;;  %s724_s17 = smov [#allocation5]   ;;  %s725_s19 = smov [#allocation2]  }
   0x3   :  { %s44_s18 = sshll.u32 %s724_s17, 4  ;;  %s26_s20 = sshll.u32 %s725_s19, 4  ;;  %s45_s18 = int_to_ptr.vmem [resolvable:$true] %s44_s18  ;;  %s27_s20 = int_to_ptr.vmem [resolvable:$true] %s26_s20 }
   0x4   :  { %s646_s21 = scalar_lea.vmem %s45_s18, 512  ;;  %p651_p1 = scmp.lt.s32.totalorder %s45_s18, %s45_s18 }
   0x5   :  { %p647_p0 = scmp.ne.s32.totalorder %s45_s18, %s646_s21  ;;  %p652_p2 = scmp.lt.s32.totalorder %s646_s21, %s646_s21 }
   0x7   :  { %p653_p3 = por %p652_p2, %p651_p1 }
   0x9   :  { %p654_p4 = pnand %p653_p3, %p647_p0 }
   0xb   :  { %657 = shalt.err (!%p654_p4)
}
   0xc   :  { %s726_s22 = smov 64   ;;  %s727_s23 = smov 4  }
   0xd   :  { %50 = dma.hbm_to_vmem [thread:$0]  %s883_s5, 512, %s45_s18, [#allocation6], %s726_s22, %s726_s22, %s727_s23  }
   0xe   :  { %s666_s26 = scalar_lea.vmem %s27_s20, 256  ;;  %p671_p6 = scmp.lt.s32.totalorder %s27_s20, %s27_s20 }
   0xf   :  { %p667_p5 = scmp.ne.s32.totalorder %s27_s20, %s666_s26  ;;  %p672_p7 = scmp.lt.s32.totalorder %s666_s26, %s666_s26 }
  0x11   :  { %p673_p8 = por %p672_p7, %p671_p6 }
  0x13   :  { %p674_p9 = pnand %p673_p8, %p667_p5 }
  0x15   :  { %677 = shalt.err (!%p674_p9)
}
  0x16   :  { %32 = dma.hbm_to_vmem [thread:$0]  %s879_s1, 256, %s27_s20, [#allocation3], %s726_s22, %s726_s22, %s727_s23  }
  0x17   :  { %s728_s29 = smov [#allocation7]  }
  0x18   :  { %s58_s30 = sshll.u32 %s728_s29, 4  ;;  %s59_s30 = int_to_ptr.vmem [resolvable:$true] %s58_s30 }
  0x19   :  { %s686_s12 = scalar_lea.vmem %s59_s30, 512  ;;  %p691_p11 = scmp.lt.s32.totalorder %s59_s30, %s59_s30 }
  0x1a   :  { %p687_p10 = scmp.ne.s32.totalorder %s59_s30, %s686_s12  ;;  %p692_p12 = scmp.lt.s32.totalorder %s686_s12, %s686_s12 }
  0x1c   :  { %p693_p13 = por %p692_p12, %p691_p11 }
  0x1e   :  { %p694_p0 = pnand %p693_p13, %p687_p10 }
  0x20   :  { %697 = shalt.err (!%p694_p0)
}
  0x21   :  { %64 = dma.hbm_to_vmem [thread:$0]  %s885_s7, 512, %s59_s30, [#allocation6], %s726_s22, %s726_s22, %s727_s23  }
  0x22   :  { %718 = dma.done.wait [#allocation3], 256  }
  0x23   :  { %719 = vsyncadd [#allocation3], 4294967040 }
  0x24   :  { %720 = dma.done.wait [#allocation6], 1024  }
  0x25   :  { %721 = vsyncadd [#allocation6], 4294966272  ;;  %v729_v0 = vmov 0.0   ;;  %vm730_vm0 = vmmov 0   ;;  %v620_v1 = vld [vmem:[#allocation2 + $0x8] sm:$0xff]   ;;  %v621_v2 = vld [vmem:[#allocation2] sm:$0xff]  }
  0x26   :  { %556 = vmatprep.subr.bf16.mxu0 %v729_v0  ;;  %560 = vmatprep.mubr.msk.bf16.mxu0 %vm730_vm0, %v729_v0  ;;  %v622_v3 = vld [vmem:[%s881_s3 + $0x18] sm:$0xff]   ;;  %v81_v4 = vld [vmem:[%s878_s0] sm:$0xf]  ;;  %vm105_vm1 = vcmask 261120   ;;  %v623_v5 = vld [vmem:[%s881_s3 + $0x10] sm:$0xff]   ;;  %vm190_vm2 = vcmask 523264  }
  0x27   :  { %564 = vmatprep.subr.bf16.mxu1 %v729_v0  ;;  %572 = vmatprep.mubr.msk.bf16.mxu1 %vm730_vm0, %v729_v0  ;;  %v624_v6 = vld [vmem:[%s881_s3 + $0x8] sm:$0xff]   ;;  %v625_v7 = vld [vmem:[%s881_s3] sm:$0xff]   ;;  %v628_v18 = vld [vmem:[#allocation5 + $0x8] sm:$0xff]   ;;  %vm487_vm3 = vcmask 130048  }
  0x28   :  { %557 = vmatpush3.bf16.msra.mxu0 %v620_v1  ;;  %565 = vmatpush3.bf16.msra.mxu1 %v622_v3  ;;  %v626_v8 = vld [vmem:[#allocation5 + $0x18] sm:$0xff]   ;;  %v627_v9 = vld [vmem:[#allocation5 + $0x10] sm:$0xff]   ;;  %v629_v19 = vld [vmem:[#allocation5] sm:$0xff]  }
  0x29   :  { %558 = vmatprep.subr.bf16.mxu0 %v729_v0  ;;  %566 = vmatprep.subr.bf16.mxu1 %v729_v0  ;;  %v505_v10 = vld [vmem:[%s880_s2] ss:$0 sm:$0xff]  ;;  %v630_v20 = vld [vmem:[#allocation7 + $0x18] sm:$0xff]   ;;  %v632_v30 = vld [vmem:[#allocation7 + $0x8] sm:$0xff]  }
  0x2a   :  { %v631_v21 = vld [vmem:[#allocation7 + $0x10] sm:$0xff]   ;;  %v633_v31 = vld [vmem:[#allocation7] sm:$0xff]   ;;  %v634_v32 = vld [vmem:[%s887_s9 + $0x18] sm:$0xff]  }
  0x2b   :  { %v509_v22 = vld [vmem:[%s882_s4] ss:$0 sm:$0xff]  ;;  %v635_v33 = vld [vmem:[%s887_s9 + $0x10] sm:$0xff]   ;;  %v636_v42 = vld [vmem:[%s887_s9 + $0x8] sm:$0xff]  }
  0x2c   :  { %559 = vmatpush3.bf16.msra.mxu0 %v621_v2  ;;  %567 = vmatpush3.bf16.msra.mxu1 %v623_v5  ;;  %v515_v34 = vld [vmem:[%s884_s6] ss:$0 sm:$0xff] }
  0x2d   :  { %576 = vmatprep.subr.bf16.mxu0 %v729_v0  ;;  %568 = vmatprep.subr.bf16.mxu1 %v729_v0  ;;  %v637_v43 = vld [vmem:[%s887_s9] sm:$0xff]   ;;  %s731_s9 = smov [#allocation8]  }
  0x2e   :  { %v521_v44 = vld [vmem:[%s886_s8] ss:$0 sm:$0xff]  ;;  %s495_s7 = sshll.u32 %s731_s9, 4  ;;  %s496_s7 = int_to_ptr.vmem [resolvable:$true] %s495_s7 }
  0x2f   :  { %561 = vmatmul.mubr.msk.bf16.vlgmr.msra.gmra.mxu0 %vm105_vm1, %v81_v4  ;;  %v527_v52 = vld [vmem:[%s888_s10] ss:$0 sm:$0xff]  ;;  %s698_s8 = scalar_lea.vmem %s496_s7, 128  ;;  %p703_p2 = scmp.lt.s32.totalorder %s496_s7, %s496_s7 }
  0x30   :  { %584 = vmatprep.mubr.msk.bf16.mxu0 %vm730_vm0, %v729_v0  ;;  %569 = vmatpush3.bf16.msra.mxu1 %v624_v6  ;;  %p699_p1 = scmp.ne.s32.totalorder %s496_s7, %s698_s8  ;;  %p704_p3 = scmp.lt.s32.totalorder %s698_s8, %s698_s8 }
  0x31   :  { %570 = vmatprep.subr.bf16.mxu1 %v729_v0  ;;  %577 = vmatpush3.bf16.msra.mxu0 %v626_v8 }
  0x32   :  { %578 = vmatprep.subr.bf16.mxu0 %v729_v0  ;;  %p705_p4 = por %p704_p3, %p703_p2 }
  0x34   :  { %571 = vmatpush3.bf16.msra.mxu1 %v625_v7  ;;  %p706_p5 = pnand %p705_p4, %p699_p1 }
  0x35   :  { %588 = vmatprep.subr.bf16.mxu1 %v729_v0  ;;  %579 = vmatpush3.bf16.msra.mxu0 %v627_v9 }
  0x36   :  { %580 = vmatprep.subr.bf16.mxu0 %v729_v0 }
  0x39   :  { %581 = vmatpush3.bf16.msra.mxu0 %v628_v18 }
  0x3a   :  { %582 = vmatprep.subr.bf16.mxu0 %v729_v0 }
  0x3d   :  { %583 = vmatpush3.bf16.msra.mxu0 %v629_v19 }
  0x3e   :  { %600 = vmatprep.subr.bf16.mxu0 %v729_v0 }
  0xef   :  { %v143_v11 = vpop.f32.mrf.mxu0 }
  0xf0   :  { %v144_v12 = vadd.f32 %v505_v10, %v143_v11 }
  0xf1   :  { %v562_v13 = vpop.f32.mrf.mxu0 }
  0xf2   :  { %v149_v14 = vmax.f32 %v144_v12, 0.0 }
  0xf3   :  { %v146_v15 = vpop.f32.mrf.mxu0 }
  0xf4   :  { %v150_v16 = vpack.c.bf16 %v149_v14, %v149_v14 }
  0xf5   :  { %v563_v17 = vpop.f32.mrf.mxu0 }
  0xf6   :  { %573 = vmatmul.mubr.msk.bf16.vlgmr.msra.gmra.mxu1 %vm190_vm2, %v150_v16 }
  0xf7   :  { %596 = vmatprep.mubr.msk.bf16.mxu1 %vm730_vm0, %v729_v0  ;;  %589 = vmatpush3.bf16.msra.mxu1 %v630_v20 }
  0xf8   :  { %590 = vmatprep.subr.bf16.mxu1 %v729_v0 }
  0xfb   :  { %591 = vmatpush3.bf16.msra.mxu1 %v631_v21 }
  0xfc   :  { %592 = vmatprep.subr.bf16.mxu1 %v729_v0 }
  0xff   :  { %593 = vmatpush3.bf16.msra.mxu1 %v632_v30 }
 0x100   :  { %594 = vmatprep.subr.bf16.mxu1 %v729_v0 }
 0x103   :  { %595 = vmatpush3.bf16.msra.mxu1 %v633_v31 }
 0x1b6   :  { %v228_v23 = vpop.f32.mrf.mxu1 }
 0x1b7   :  { %v229_v24 = vadd.f32 %v509_v22, %v228_v23 }
 0x1b8   :  { %v574_v25 = vpop.f32.mrf.mxu1 }
 0x1b9   :  { %v234_v26 = vmax.f32 %v229_v24, 0.0 }
 0x1ba   :  { %v231_v27 = vpop.f32.mrf.mxu1 }
 0x1bb   :  { %v235_v28 = vpack.c.bf16 %v234_v26, %v234_v26 }
 0x1bc   :  { %v575_v29 = vpop.f32.mrf.mxu1 }
 0x1bd   :  { %585 = vmatmul.mubr.msk.bf16.vlgmr.msra.gmra.mxu0 %vm190_vm2, %v235_v28 }
 0x1be   :  { %608 = vmatprep.mubr.msk.bf16.mxu0 %vm730_vm0, %v729_v0  ;;  %601 = vmatpush3.bf16.msra.mxu0 %v634_v32 }
 0x1bf   :  { %602 = vmatprep.subr.bf16.mxu0 %v729_v0 }
 0x1c2   :  { %603 = vmatpush3.bf16.msra.mxu0 %v635_v33 }
 0x1c3   :  { %604 = vmatprep.subr.bf16.mxu0 %v729_v0 }
 0x1c6   :  { %605 = vmatpush3.bf16.msra.mxu0 %v636_v42 }
 0x1c7   :  { %606 = vmatprep.subr.bf16.mxu0 %v729_v0 }
 0x1ca   :  { %607 = vmatpush3.bf16.msra.mxu0 %v637_v43 }
 0x27d   :  { %v312_v35 = vpop.f32.mrf.mxu0 }
 0x27e   :  { %v313_v36 = vadd.f32 %v515_v34, %v312_v35 }
 0x27f   :  { %v586_v37 = vpop.f32.mrf.mxu0 }
 0x280   :  { %v318_v38 = vmax.f32 %v313_v36, 0.0 }
 0x281   :  { %v315_v39 = vpop.f32.mrf.mxu0 }
 0x282   :  { %v319_v40 = vpack.c.bf16 %v318_v38, %v318_v38 }
 0x283   :  { %v587_v41 = vpop.f32.mrf.mxu0 }
 0x284   :  { %597 = vmatmul.mubr.msk.bf16.vlgmr.msra.gmra.mxu1 %vm190_vm2, %v319_v40 }
 0x344   :  { %v396_v45 = vpop.f32.mrf.mxu1 }
 0x345   :  { %v397_v46 = vadd.f32 %v521_v44, %v396_v45 }
 0x346   :  { %v598_v47 = vpop.f32.mrf.mxu1 }
 0x347   :  { %v402_v48 = vmax.f32 %v397_v46, 0.0 }
 0x348   :  { %v399_v49 = vpop.f32.mrf.mxu1 }
 0x349   :  { %v403_v50 = vpack.c.bf16 %v402_v48, %v402_v48 }
 0x34a   :  { %v599_v51 = vpop.f32.mrf.mxu1 }
 0x34b   :  { %609 = vmatmul.mubr.msk.bf16.vlgmr.msra.gmra.mxu0 %vm190_vm2, %v403_v50 }
 0x40b   :  { %v480_v53 = vpop.f32.mrf.mxu0 }
 0x40c   :  { %v481_v54 = vadd.f32 %v527_v52, %v480_v53 }
 0x40d   :  { %v610_v55 = vpop.f32.mrf.mxu0 }
 0x40e   :  { %v486_v56 = vmax.f32 %v481_v54, 0.0 }
 0x40f   :  { %v483_v57 = vpop.f32.mrf.mxu0 }
 0x410   :  { %488 = vst.msk [vmem:[#allocation8] sm:$0xff] %vm487_vm3, %v486_v56 }
 0x411   :  { %v611_v58 = vpop.f32.mrf.mxu0 }
 0x412   :  { %709 = shalt.err (!%p706_p5)
}
 0x413   :  { %498 = dma.vmem_to_hbm [thread:$0]  %s496_s7, 128, %s889_s11, [#allocation4]  }
 0x414   :  { %722 = dma.done.wait [#allocation4], 128  }
 0x415   :  { %723 = vsyncadd [#allocation4], 4294967168 }
 0x416   :  { %502 = vsyncpa [#allocation3], 1 }
 0x417   :  { %503 = vsyncpa [#allocation6], 1 }
 0x418   :  { %504 = vsyncpa [#allocation4], 1 }

</bundles_post_ra>
